<compile_context>
chip_gen: v6e
topology: v6e:2x2x1
jax: 0.10.0
libtpu: 0.0.40
codegen_flags: <defaults>
</compile_context>

<pallas_src>
import math

import jax
import jax.numpy as jnp
from jax.experimental import pallas as pl
from jax.experimental.pallas import tpu as pltpu


def _device_kind():
    try:
        return jax.devices()[0].device_kind.lower()
    except Exception:
        return ""


def sobelxy_pallas(x):
    """Pallas implementation of Sobelxy.forward(x) -> (|sobelx|, |sobely|)."""
    N, C, H, W = x.shape
    NC = N * C
    dtype = x.dtype
    itemsize = dtype.itemsize

    # ---- per-generation budgets -------------------------------------------
    kind = _device_kind()
    if "v5" in kind:
        target_block_bytes, vmem_limit, vmem_cap = 2 << 20, 64 << 20, 110 << 20
    elif "v6" in kind:
        target_block_bytes, vmem_limit, vmem_cap = 4 << 20, 96 << 20, 110 << 20
    elif "v7" in kind:
        target_block_bytes, vmem_limit, vmem_cap = 2 << 20, 48 << 20, 56 << 20
    else:
        target_block_bytes, vmem_limit, vmem_cap = 2 << 20, 64 << 20, 96 << 20
    is_v7 = "v7" in kind

    # ---- lane-dense packing: G planes side-by-side along the lane axis ----
    if W >= 128:
        G = 1
    elif 128 % W == 0:
        G = 128 // W
    else:
        G = -(-128 // W)  # ceil(128 / W)
    L = G * W

    num_groups = -(-NC // G)

    # sublane alignment multiple for tg (groups per block), dtype-aware
    sub = {4: 8, 2: 16, 1: 32}.get(itemsize, 8)
    m = sub // math.gcd(H, sub)

    # groups per block, sized against the real per-step footprint
    group_bytes = H * L * itemsize
    tg = max(1, target_block_bytes // max(group_bytes, 1))
    tg = max(m, (tg // m) * m)
    tg = min(tg, m * (-(-num_groups // m)))

    # v7x megacore: make sure the parallel grid spans both TensorCores
    if is_v7 and num_groups > m and -(-num_groups // tg) < 2:
        tg = max(m, m * (-(-num_groups // (2 * m))))

    nsteps = -(-num_groups // tg)
    ng_pad = nsteps * tg
    rows_blk = tg * H

    # very large planes: raise the scoped VMEM limit if the minimum block
    # already blows the target (see TODO at top for the full fix).
    est_footprint = 13 * rows_blk * L * max(itemsize, 4)
    if est_footprint > vmem_limit:
        vmem_limit = min(vmem_cap, est_footprint + (8 << 20))

    # ---- build the lane-dense slab -----------------------------------------
    total_planes = ng_pad * G
    x3 = x.reshape(NC, H, W)
    if total_planes != NC:
        x3 = jnp.pad(x3, ((0, total_planes - NC), (0, 0), (0, 0)))
    # (ng_pad, G, H, W) -> (ng_pad, H, G, W) -> (ng_pad*H, G*W)
    slab = x3.reshape(ng_pad, G, H, W).transpose(0, 2, 1, 3).reshape(ng_pad * H, L)

    # ---- kernel -------------------------------------------------------------
    def kernel(x_ref, gx_ref, gy_ref):
        xv = x_ref[...].astype(jnp.float32)
        rows, lanes = xv.shape  # static block shape

        # Horizontal (lane) zero padding per packed plane of width W; the
        # modulo also kills leakage between planes packed along the lanes.
        col = jax.lax.broadcasted_iota(jnp.int32, (rows, lanes), 1) % W
        not_last_col = col != (W - 1)
        not_first_col = col != 0

        # Vertical (sublane) zero padding: rows within each H-row image.
        # Blocks always start on a plane boundary, so the pattern is
        # block-invariant and can be generated in-kernel.
        r = jax.lax.broadcasted_iota(jnp.int32, (rows, 1), 0) % H
        keep_up = (r != 0).astype(jnp.float32)        # kills row i-1 at i == 0
        keep_dn = (r != (H - 1)).astype(jnp.float32)  # kills row i+1 at i == H-1

        # Horizontal neighbours with zero padding at image borders.
        x_e = jnp.where(not_last_col, pltpu.roll(xv, shift=lanes - 1, axis=1), 0.0)
        x_w = jnp.where(not_first_col, pltpu.roll(xv, shift=1, axis=1), 0.0)

        # |Gx| first so the dh chain is dead before the sh chain peaks.
        dh = x_e - x_w                                   # [-1, 0, 1]
        dh_n = pltpu.roll(dh, shift=1, axis=0) * keep_up
        dh_s = pltpu.roll(dh, shift=rows - 1, axis=0) * keep_dn
        gx_ref[...] = jnp.abs(dh_n + 2.0 * dh + dh_s).astype(gx_ref.dtype)

        sh = x_w + 2.0 * xv + x_e                        # [1, 2, 1]
        sh_n = pltpu.roll(sh, shift=1, axis=0) * keep_up
        sh_s = pltpu.roll(sh, shift=rows - 1, axis=0) * keep_dn
        gy_ref[...] = jnp.abs(sh_n - sh_s).astype(gy_ref.dtype)

    spec = pl.BlockSpec((rows_blk, L), lambda i: (i, 0))

    gx2, gy2 = pl.pallas_call(
        kernel,
        out_shape=(
            jax.ShapeDtypeStruct((ng_pad * H, L), dtype),
            jax.ShapeDtypeStruct((ng_pad * H, L), dtype),
        ),
        grid_spec=pltpu.PrefetchScalarGridSpec(
            num_scalar_prefetch=0,
            grid=(nsteps,),
            in_specs=[spec],
            out_specs=[spec, spec],
        ),
        compiler_params=pltpu.CompilerParams(
            dimension_semantics=("parallel",),
            vmem_limit_bytes=int(vmem_limit),
        ),
        cost_estimate=pl.CostEstimate(
            flops=16 * NC * H * W,
            transcendentals=0,
            bytes_accessed=3 * NC * H * W * itemsize,
        ),
    )(slab)

    def unpack(y2):
        y = y2.reshape(ng_pad, H, G, W).transpose(0, 2, 1, 3)
        return y.reshape(ng_pad * G, H, W)[:NC].reshape(N, C, H, W)

    return unpack(gx2), unpack(gy2)


def _ref_sobelxy(x):
    """Pure-JAX reference matching the PyTorch module (conv2d, padding=1, abs)."""
    kx = jnp.array([[-1.0, 0.0, 1.0], [-2.0, 0.0, 2.0], [-1.0, 0.0, 1.0]], jnp.float32)
    ky = jnp.array([[1.0, 2.0, 1.0], [0.0, 0.0, 0.0], [-1.0, -2.0, -1.0]], jnp.float32)
    N, C, H, W = x.shape
    xr = x.reshape(N * C, 1, H, W).astype(jnp.float32)

    def conv(img, k):
        return jax.lax.conv_general_dilated(
            img, k.reshape(1, 1, 3, 3),
            window_strides=(1, 1), padding=((1, 1), (1, 1)),
            dimension_numbers=("NCHW", "OIHW", "NCHW"))

    sx = jnp.abs(conv(xr, kx)).reshape(N, C, H, W).astype(x.dtype)
    sy = jnp.abs(conv(xr, ky)).reshape(N, C, H, W).astype(x.dtype)
    return sx, sy


if __name__ == "__main__":
    key = jax.random.PRNGKey(0)
    # The module's conv weight is (1, 1, 3, 3) -> single-channel input.
    x = jax.random.normal(key, (2, 1, 16, 16), dtype=jnp.float32)

    gx, gy = sobelxy_pallas(x)
    gx = jax.block_until_ready(gx)
    gy = jax.block_until_ready(gy)

    rx, ry = _ref_sobelxy(x)
    rx = jax.block_until_ready(rx)
    ry = jax.block_until_ready(ry)

    assert gx.shape == x.shape and gy.shape == x.shape
    err_x = float(jnp.max(jnp.abs(gx - rx)))
    err_y = float(jnp.max(jnp.abs(gy - ry)))
    assert err_x < 1e-4 and err_y < 1e-4, (err_x, err_y)

    print("KERNEL_OK")
</pallas_src>

<mosaic_0001>
module attributes {stable_mosaic.version = 11 : i64} {
  func.func @kernel(%arg0: i32, %arg1: memref<16x128xf32, #tpu.memory_space<vmem>>, %arg2: memref<16x128xf32, #tpu.memory_space<vmem>>, %arg3: memref<16x128xf32, #tpu.memory_space<vmem>>) attributes {dimension_semantics = [#tpu.dimension_semantics<parallel>], iteration_bounds = array<i64: 1>, scalar_prefetch = 0 : i64, scratch_operands = 0 : i64, tpu.core_type = #tpu.core_type<tc>, window_params = [{transform_indices = @transform_0, window_bounds = array<i64: 16, 128>}, {transform_indices = @transform_1, window_bounds = array<i64: 16, 128>}, {transform_indices = @transform_2, window_bounds = array<i64: 16, 128>}]} {
    %c0 = arith.constant 0 : index
    %c0_0 = arith.constant 0 : index
    %0 = vector.load %arg1[%c0, %c0_0] : memref<16x128xf32, #tpu.memory_space<vmem>>, vector<16x128xf32>
    %1 = tpu.iota {dimensions = array<i32: 1>} : vector<16x128xi32>
    %c16_i32 = arith.constant 16 : i32
    %c0_i32 = arith.constant 0 : i32
    %2 = arith.cmpi eq, %c16_i32, %c0_i32 : i32
    %c1_i32 = arith.constant 1 : i32
    %3 = arith.select %2, %c1_i32, %c16_i32 : i32
    %4 = vector.broadcast %3 : i32 to vector<16x128xi32>
    %5 = arith.remsi %1, %4 : vector<16x128xi32>
    %c0_i32_1 = arith.constant 0 : i32
    %6 = vector.broadcast %c0_i32_1 : i32 to vector<16x128xi32>
    %7 = arith.cmpi ne, %5, %6 : vector<16x128xi32>
    %c0_i32_2 = arith.constant 0 : i32
    %8 = vector.broadcast %c0_i32_2 : i32 to vector<16x128xi32>
    %9 = arith.cmpi slt, %5, %8 : vector<16x128xi32>
    %c0_i32_3 = arith.constant 0 : i32
    %10 = arith.cmpi slt, %3, %c0_i32_3 : i32
    %11 = vector.broadcast %10 : i1 to vector<16x128xi1>
    %12 = vector.broadcast %11 : vector<16x128xi1> to vector<16x128xi1>
    %13 = arith.xori %9, %12 : vector<16x128xi1>
    %14 = arith.andi %13, %7 : vector<16x128xi1>
    %15 = vector.broadcast %3 : i32 to vector<16x128xi32>
    %16 = arith.addi %5, %15 : vector<16x128xi32>
    %17 = arith.select %14, %16, %5 : vector<16x128xi1>, vector<16x128xi32>
    %c15_i32 = arith.constant 15 : i32
    %18 = vector.broadcast %c15_i32 : i32 to vector<16x128xi32>
    %19 = arith.cmpi ne, %17, %18 : vector<16x128xi32>
    %c0_i32_4 = arith.constant 0 : i32
    %20 = vector.broadcast %c0_i32_4 : i32 to vector<16x128xi32>
    %21 = arith.cmpi ne, %17, %20 : vector<16x128xi32>
    %22 = tpu.iota {dimensions = array<i32: 0>} : vector<16x1xi32>
    %c16_i32_5 = arith.constant 16 : i32
    %c0_i32_6 = arith.constant 0 : i32
    %23 = arith.cmpi eq, %c16_i32_5, %c0_i32_6 : i32
    %c1_i32_7 = arith.constant 1 : i32
    %24 = arith.select %23, %c1_i32_7, %c16_i32_5 : i32
    %25 = vector.broadcast %24 : i32 to vector<16x1xi32>
    %26 = arith.remsi %22, %25 : vector<16x1xi32>
    %c0_i32_8 = arith.constant 0 : i32
    %27 = vector.broadcast %c0_i32_8 : i32 to vector<16x1xi32>
    %28 = arith.cmpi ne, %26, %27 : vector<16x1xi32>
    %c0_i32_9 = arith.constant 0 : i32
    %29 = vector.broadcast %c0_i32_9 : i32 to vector<16x1xi32>
    %30 = arith.cmpi slt, %26, %29 : vector<16x1xi32>
    %c0_i32_10 = arith.constant 0 : i32
    %31 = arith.cmpi slt, %24, %c0_i32_10 : i32
    %32 = vector.broadcast %31 : i1 to vector<16x1xi1>
    %33 = vector.broadcast %32 : vector<16x1xi1> to vector<16x1xi1>
    %34 = arith.xori %30, %33 : vector<16x1xi1>
    %35 = arith.andi %34, %28 : vector<16x1xi1>
    %36 = vector.broadcast %24 : i32 to vector<16x1xi32>
    %37 = arith.addi %26, %36 : vector<16x1xi32>
    %38 = arith.select %35, %37, %26 : vector<16x1xi1>, vector<16x1xi32>
    %c0_i32_11 = arith.constant 0 : i32
    %39 = vector.broadcast %c0_i32_11 : i32 to vector<16x1xi32>
    %40 = arith.cmpi ne, %38, %39 : vector<16x1xi32>
    %41 = arith.extui %40 : vector<16x1xi1> to vector<16x1xi32>
    %42 = arith.sitofp %41 : vector<16x1xi32> to vector<16x1xf32>
    %c15_i32_12 = arith.constant 15 : i32
    %43 = vector.broadcast %c15_i32_12 : i32 to vector<16x1xi32>
    %44 = arith.cmpi ne, %38, %43 : vector<16x1xi32>
    %45 = arith.extui %44 : vector<16x1xi1> to vector<16x1xi32>
    %46 = arith.sitofp %45 : vector<16x1xi32> to vector<16x1xf32>
    %c127_i32 = arith.constant 127 : i32
    %47 = tpu.dynamic_rotate %0 by %c127_i32 dim 1 : vector<16x128xf32>, i32 -> vector<16x128xf32>
    %cst = arith.constant 0.000000e+00 : f32
    %48 = vector.broadcast %cst : f32 to vector<16x128xf32>
    %49 = arith.select %19, %47, %48 : vector<16x128xi1>, vector<16x128xf32>
    %c1_i32_13 = arith.constant 1 : i32
    %50 = tpu.dynamic_rotate %0 by %c1_i32_13 dim 1 : vector<16x128xf32>, i32 -> vector<16x128xf32>
    %cst_14 = arith.constant 0.000000e+00 : f32
    %51 = vector.broadcast %cst_14 : f32 to vector<16x128xf32>
    %52 = arith.select %21, %50, %51 : vector<16x128xi1>, vector<16x128xf32>
    %53 = arith.subf %49, %52 : vector<16x128xf32>
    %c1_i32_15 = arith.constant 1 : i32
    %54 = tpu.dynamic_rotate %53 by %c1_i32_15 dim 0 : vector<16x128xf32>, i32 -> vector<16x128xf32>
    %55 = vector.broadcast %42 : vector<16x1xf32> to vector<16x128xf32>
    %56 = arith.mulf %54, %55 : vector<16x128xf32>
    %c15_i32_16 = arith.constant 15 : i32
    %57 = tpu.dynamic_rotate %53 by %c15_i32_16 dim 0 : vector<16x128xf32>, i32 -> vector<16x128xf32>
    %58 = vector.broadcast %46 : vector<16x1xf32> to vector<16x128xf32>
    %59 = arith.mulf %57, %58 : vector<16x128xf32>
    %cst_17 = arith.constant 2.000000e+00 : f32
    %60 = vector.broadcast %cst_17 : f32 to vector<16x128xf32>
    %61 = arith.mulf %60, %53 : vector<16x128xf32>
    %62 = arith.addf %56, %61 : vector<16x128xf32>
    %63 = arith.addf %62, %59 : vector<16x128xf32>
    %64 = math.absf %63 : vector<16x128xf32>
    %c0_18 = arith.constant 0 : index
    %c0_19 = arith.constant 0 : index
    %65 = vector.load %arg2[%c0_18, %c0_19] : memref<16x128xf32, #tpu.memory_space<vmem>>, vector<16x128xf32>
    tpu.vector_store %arg2[%c0_18, %c0_19], %64 {strides = array<i32>} : memref<16x128xf32, #tpu.memory_space<vmem>>, vector<16x128xf32>,
    %cst_20 = arith.constant 2.000000e+00 : f32
    %66 = vector.broadcast %cst_20 : f32 to vector<16x128xf32>
    %67 = arith.mulf %66, %0 : vector<16x128xf32>
    %68 = arith.addf %52, %67 : vector<16x128xf32>
    %69 = arith.addf %68, %49 : vector<16x128xf32>
    %c1_i32_21 = arith.constant 1 : i32
    %70 = tpu.dynamic_rotate %69 by %c1_i32_21 dim 0 : vector<16x128xf32>, i32 -> vector<16x128xf32>
    %71 = vector.broadcast %42 : vector<16x1xf32> to vector<16x128xf32>
    %72 = arith.mulf %70, %71 : vector<16x128xf32>
    %c15_i32_22 = arith.constant 15 : i32
    %73 = tpu.dynamic_rotate %69 by %c15_i32_22 dim 0 : vector<16x128xf32>, i32 -> vector<16x128xf32>
    %74 = vector.broadcast %46 : vector<16x1xf32> to vector<16x128xf32>
    %75 = arith.mulf %73, %74 : vector<16x128xf32>
    %76 = arith.subf %72, %75 : vector<16x128xf32>
    %77 = math.absf %76 : vector<16x128xf32>
    %c0_23 = arith.constant 0 : index
    %c0_24 = arith.constant 0 : index
    %78 = vector.load %arg3[%c0_23, %c0_24] : memref<16x128xf32, #tpu.memory_space<vmem>>, vector<16x128xf32>
    tpu.vector_store %arg3[%c0_23, %c0_24], %77 {strides = array<i32>} : memref<16x128xf32, #tpu.memory_space<vmem>>, vector<16x128xf32>,
    return
  }
  func.func @transform_0(%arg0: i32) -> (i32, i32) {
    %c0_i32 = arith.constant 0 : i32
    %c0_i32_0 = arith.constant 0 : i32
    return %arg0, %c0_i32 : i32, i32
  }
  func.func @transform_1(%arg0: i32) -> (i32, i32) {
    %c0_i32 = arith.constant 0 : i32
    %c0_i32_0 = arith.constant 0 : i32
    return %arg0, %c0_i32 : i32, i32
  }
  func.func @transform_2(%arg0: i32) -> (i32, i32) {
    %c0_i32 = arith.constant 0 : i32
    %c0_i32_0 = arith.constant 0 : i32
    return %arg0, %c0_i32 : i32, i32
  }
}

</mosaic_0001>

<bundles_post_ra>
// kernel: tpu_custom_call.1
= control target key start
LH: loop header
LB: loop body
LE: loop exit
PB: predicated region body
PF: predicated region fallthrough
CT: control target
= control target key end

     0   :  { %8 = vsyncpa [#allocation3], 0  ;;  %s319_s0 = inlined_call_operand.hbm [shape: f32[16,128], index: 0, kind: input, shape index: {}]   ;;  %s320_s1 = inlined_call_operand.hbm [shape: f32[16,128], index: 1, kind: output, shape index: {0}]   ;;  %s321_s2 = inlined_call_operand.hbm [shape: f32[16,128], index: 2, kind: output, shape index: {1}]  }
   0x1   :  { %9 = vsyncpa [#allocation4], 0 }
   0x2   :  { %10 = vsyncpa [#allocation7], 0  ;;  %s254_s9 = smov [#allocation2]  }
   0x3   :  { %s16_s10 = sshll.u32 %s254_s9, 4  ;;  %s17_s10 = int_to_ptr.vmem [resolvable:$true] %s16_s10 }
   0x4   :  { %s196_s11 = scalar_lea.vmem %s17_s10, 256  ;;  %p201_p1 = scmp.lt.s32.totalorder %s17_s10, %s17_s10 }
   0x5   :  { %p197_p0 = scmp.ne.s32.totalorder %s17_s10, %s196_s11  ;;  %p202_p2 = scmp.lt.s32.totalorder %s196_s11, %s196_s11 }
   0x7   :  { %p203_p3 = por %p202_p2, %p201_p1 }
   0x9   :  { %p204_p4 = pnand %p203_p3, %p197_p0 }
   0xb   :  { %207 = shalt.err (!%p204_p4)
}
   0xc   :  { %s255_s12 = smov 128   ;;  %s256_s13 = smov 8  }
   0xd   :  { %22 = dma.hbm_to_vmem [thread:$0]  %s319_s0, 256, %s17_s10, [#allocation3], %s255_s12, %s255_s12, %s256_s13  }
   0xe   :  { %248 = dma.done.wait [#allocation3], 256  }
   0xf   :  { %249 = vsyncadd [#allocation3], 4294967040  ;;  %v26_v0 = vld [vmem:[#allocation2] sm:$0xff]  ;;  %s257_s16 = smov 1   ;;  %s258_s17 = smov 127   ;;  %v27_v1 = vld [vmem:[#allocation2 + $0x8] sm:$0xff]  ;;  %v28_v2 = vlaneseq }
  0x10   :  { %89 = vrot.lane.b32.xlu1 %v26_v0, %s257_s16  ;;  %83 = vrot.lane.b32.xlu0 %v26_v0, %s258_s17  ;;  %v121_v7 = vmul.f32 2.0, %v26_v0  ;;  %v122_v16 = vmul.f32 2.0, %v27_v1  ;;  %v259_v27 = vmov 0.0   ;;  %s260_s0 = smov [#allocation5]   ;;  %s261_s19 = smov [#allocation6]  }
  0x11   :  { %v29_v3 = vand.u32 127, %v28_v2  ;;  %v45_v5 = vshrl.u32 %v28_v2, 7  ;;  %s150_s18 = sshll.u32 %s260_s0, 4  ;;  %s162_s20 = sshll.u32 %s261_s19, 4  ;;  %s151_s18 = int_to_ptr.vmem [resolvable:$true] %s150_s18  ;;  %s163_s20 = int_to_ptr.vmem [resolvable:$true] %s162_s20 }
  0x12   :  { %s208_s21 = scalar_lea.vmem %s151_s18, 256  ;;  %p213_p6 = scmp.lt.s32.totalorder %s151_s18, %s151_s18 }
  0x13   :  { %v34_v4 = vand.u32 15, %v29_v3  ;;  %v46_v9 = vadd.s32 8, %v45_v5  ;;  %v51_v12 = vand.u32 15, %v45_v5  ;;  %vm99_vm4 = vcmp.lt.s32.totalorder %v45_v5, 1  ;;  %p209_p5 = scmp.ne.s32.totalorder %s151_s18, %s208_s21  ;;  %p214_p7 = scmp.lt.s32.totalorder %s208_s21, %s208_s21 }
  0x14   :  { %91 = vrot.lane.b32.xlu1 %v27_v1, %s257_s16  ;;  %85 = vrot.lane.b32.xlu0 %v27_v1, %s258_s17  ;;  %vm106_vm5 = vcmp.lt.s32.totalorder %v45_v5, 7 }
  0x15   :  { %vm283_vm0 = vcmp.ne.s32.totalorder %v34_v4, 0  ;;  %vm287_vm1 = vcmp.ne.s32.totalorder %v34_v4, 15  ;;  %v58_v17 = vand.u32 15, %v46_v9  ;;  %vm71_vm2 = vcmp.ne.s32.totalorder %v51_v12, 0  ;;  %p215_p8 = por %p214_p7, %p213_p6 }
  0x16   :  { %v178_v28 = vsel %vm71_vm2, 1.0, %v259_v27 }
  0x17   :  { %vm78_vm3 = vcmp.ne.s32.totalorder %v58_v17, 15  ;;  %p216_p9 = pnand %p215_p8, %p209_p5 }
  0x18   :  { %v179_v36 = vsel %vm78_vm3, 1.0, %v259_v27 }
  0x82   :  { %v90_v10 = vpop.permute.xlu1 %89  ;;  %v84_v11 = vpop.permute.xlu0 %83 }
  0x83   :  { %v93_v13 = vsel %vm283_vm0, %v90_v10, 0.0  ;;  %v87_v14 = vsel %vm287_vm1, %v84_v11, 0.0 }
  0x84   :  { %v123_v15 = vadd.f32 %v121_v7, %v93_v13  ;;  %v95_v18 = vsub.f32 %v87_v14, %v93_v13 }
  0x86   :  { %v92_v19 = vpop.permute.xlu1 %91  ;;  %v86_v20 = vpop.permute.xlu0 %85  ;;  %v125_v21 = vadd.f32 %v123_v15, %v87_v14  ;;  %v97_v26 = vrot.slane %v95_v18, 7  ;;  %v104_v33 = vrot.slane %v95_v18, 1  ;;  %v111_v41 = vmul.f32 2.0, %v95_v18 }
  0x87   :  { %v94_v22 = vsel %vm283_vm0, %v92_v19, 0.0  ;;  %v88_v23 = vsel %vm287_vm1, %v86_v20, 0.0 }
  0x88   :  { %v124_v24 = vadd.f32 %v122_v16, %v94_v22  ;;  %v96_v25 = vsub.f32 %v88_v23, %v94_v22  ;;  %v127_v34 = vrot.slane %v125_v21, 7  ;;  %v133_v35 = vrot.slane %v125_v21, 1 }
  0x8a   :  { %v98_v29 = vrot.slane %v96_v25, 7  ;;  %v105_v30 = vrot.slane %v96_v25, 1  ;;  %v112_v31 = vmul.f32 2.0, %v96_v25  ;;  %v126_v32 = vadd.f32 %v124_v24, %v88_v23 }
  0x8c   :  { %v101_v37 = vsel %vm99_vm4, %v98_v29, %v97_v26  ;;  %v128_v38 = vrot.slane %v126_v32, 7  ;;  %v134_v39 = vrot.slane %v126_v32, 1  ;;  %v100_v40 = vsel %vm99_vm4, %v97_v26, %v98_v29 }
  0x8d   :  { %v102_v42 = vmul.f32 %v178_v28, %v101_v37  ;;  %v108_v43 = vsel %vm106_vm5, %v105_v30, %v104_v33  ;;  %v114_v44 = vadd.f32 %v112_v31, %v100_v40  ;;  %v107_v53 = vsel %vm106_vm5, %v104_v33, %v105_v30 }
  0x8e   :  { %v130_v45 = vsel %vm99_vm4, %v128_v38, %v127_v34  ;;  %v136_v46 = vsel %vm106_vm5, %v134_v39, %v133_v35  ;;  %v110_v47 = vmul.f32 %v179_v36, %v108_v43  ;;  %v129_v48 = vsel %vm99_vm4, %v127_v34, %v128_v38 }
  0x8f   :  { %v113_v49 = vadd.f32 %v111_v41, %v102_v42  ;;  %v131_v50 = vmul.f32 %v178_v28, %v130_v45  ;;  %v135_v51 = vsel %vm106_vm5, %v133_v35, %v134_v39  ;;  %v138_v52 = vmul.f32 %v179_v36, %v136_v46 }
  0x90   :  { %v116_v54 = vadd.f32 %v114_v44, %v110_v47 }
  0x91   :  { %v115_v55 = vadd.f32 %v113_v49, %v107_v53  ;;  %v139_v56 = vsub.f32 %v131_v50, %v135_v51  ;;  %v140_v57 = vsub.f32 %v129_v48, %v138_v52 }
  0x92   :  { %v118_v58 = vand.u32 2147483647, %v116_v54 }
  0x93   :  { %v117_v59 = vand.u32 2147483647, %v115_v55  ;;  %v141_v60 = vand.u32 2147483647, %v139_v56  ;;  %v142_v61 = vand.u32 2147483647, %v140_v57 }
  0x94   :  { %120 = vst [vmem:[#allocation5 + $0x8] sm:$0xff] %v118_v58 }
  0x95   :  { %119 = vst [vmem:[#allocation5] sm:$0xff] %v117_v59  ;;  %143 = vst [vmem:[#allocation6] sm:$0xff] %v141_v60 }
  0x96   :  { %144 = vst [vmem:[#allocation6 + $0x8] sm:$0xff] %v142_v61 }
  0x97   :  { %219 = shalt.err (!%p216_p9)
}
  0x98   :  { %156 = dma.vmem_to_hbm [thread:$0]  %s151_s18, 256, %s320_s1, [#allocation4], %s255_s12, %s255_s12, %s256_s13  }
  0x99   :  { %s228_s24 = scalar_lea.vmem %s163_s20, 256  ;;  %p233_p11 = scmp.lt.s32.totalorder %s163_s20, %s163_s20 }
  0x9a   :  { %p229_p10 = scmp.ne.s32.totalorder %s163_s20, %s228_s24  ;;  %p234_p12 = scmp.lt.s32.totalorder %s228_s24, %s228_s24 }
  0x9c   :  { %p235_p13 = por %p234_p12, %p233_p11 }
  0x9e   :  { %p236_p0 = pnand %p235_p13, %p229_p10 }
  0xa0   :  { %239 = shalt.err (!%p236_p0)
}
  0xa1   :  { %168 = dma.vmem_to_hbm [thread:$0]  %s163_s20, 256, %s321_s2, [#allocation7], %s255_s12, %s255_s12, %s256_s13  }
  0xa2   :  { %250 = dma.done.wait [#allocation4], 256  }
  0xa3   :  { %251 = vsyncadd [#allocation4], 4294967040 }
  0xa4   :  { %252 = dma.done.wait [#allocation7], 256  }
  0xa5   :  { %253 = vsyncadd [#allocation7], 4294967040 }
  0xa6   :  { %175 = vsyncpa [#allocation3], 1 }
  0xa7   :  { %176 = vsyncpa [#allocation4], 1 }
  0xa8   :  { %177 = vsyncpa [#allocation7], 1 }

</bundles_post_ra>
